<compile_context>
chip_gen: v7x
topology: tpu7x:2x2x1
jax: 0.10.0
libtpu: 0.0.40
codegen_flags: <defaults>
</compile_context>

<pallas_src>
import functools

import jax
import jax.numpy as jnp
from jax.experimental import pallas as pl
from jax.experimental.pallas import tpu as pltpu

BN_EPS = 1e-5


def _round_up(x, m):
    return ((x + m - 1) // m) * m


def _rs_gcn_kernel(n_valid,
                   v_ref,
                   w3_ref, b3_ref,
                   ww_ref, bw_ref,
                   scale_ref, shift_ref,
                   out_ref):
    # v_ref block: (Cp, Np) for the current batch element
    v = v_ref[...].astype(jnp.float32)                                     # (Cp, Np)

    # Stacked 1x1 Conv1d for g / theta / phi: one (3*Cip, Cp) @ (Cp, Np) matmul.
    proj = jnp.dot(w3_ref[...], v, preferred_element_type=jnp.float32) + b3_ref[...]
    cip = w3_ref.shape[0] // 3                                             # static
    g_v = proj[0 * cip:1 * cip, :]                                         # (Cip, Np)
    th_v = proj[1 * cip:2 * cip, :]                                        # (Cip, Np)
    ph_v = proj[2 * cip:3 * cip, :]                                        # (Cip, Np)

    # Padded N columns hold the conv bias (v was zero-padded); mask them out of
    # the relation contraction so M is exact.  Static no-op when Np == N.
    np_ = v_ref.shape[-1]
    if np_ != n_valid:
        col = jax.lax.broadcasted_iota(jnp.int32, (1, np_), 1)
        ph_v = jnp.where(col < n_valid, ph_v, 0.0)

    # Reassociated relation product:
    #   M = g_v @ ph_v^T          (Cip, Cip)  -- contracts over N, no transpose
    #   y = (M / N) @ th_v        (Cip, Np)
    m = jax.lax.dot_general(g_v, ph_v,
                            dimension_numbers=(((1,), (1,)), ((), ())),
                            preferred_element_type=jnp.float32)
    m = m * (1.0 / n_valid)                                                # fold 1/N into tiny (Cip,Cip)
    y = jnp.dot(m, th_v, preferred_element_type=jnp.float32)               # (Cip, Np)

    # W: 1x1 conv (inter -> in) + folded BatchNorm + residual.
    w_y = jnp.dot(ww_ref[...], y, preferred_element_type=jnp.float32) + bw_ref[...]   # (Cp, Np)
    out_ref[...] = (w_y * scale_ref[...] + shift_ref[...] + v).astype(out_ref.dtype)


def rs_gcn_forward(v, params):
    """v: (B, C, N).  params: dict of conv / bn parameters (see init_params)."""
    B, C, N = v.shape
    Ci = params["w_g"].shape[0]
    dtype = v.dtype

    # Lane/sublane-friendly padded dims (8 sublanes x 128 lanes for f32).
    Cp = _round_up(C, 8)
    Cip = _round_up(Ci, 8)
    Np = _round_up(N, 128)

    def pad2(a, r, c):
        return jnp.pad(a, ((0, r - a.shape[0]), (0, c - a.shape[1])))

    # Stack g / theta / phi projection weights into one matmul operand.
    w3 = jnp.concatenate([pad2(params["w_g"], Cip, Cp),
                          pad2(params["w_theta"], Cip, Cp),
                          pad2(params["w_phi"], Cip, Cp)], axis=0)          # (3*Cip, Cp)
    b3 = jnp.concatenate([pad2(params["b_g"], Cip, 1),
                          pad2(params["b_theta"], Cip, 1),
                          pad2(params["b_phi"], Cip, 1)], axis=0)           # (3*Cip, 1)

    ww = pad2(params["w_w"], Cp, Cip)                                       # (Cp, Cip)
    bw = pad2(params["b_w"], Cp, 1)                                         # (Cp, 1)

    # Fold eval-mode BatchNorm (running stats) into per-channel scale / shift.
    scale = params["bn_gamma"] * jax.lax.rsqrt(params["bn_rvar"] + BN_EPS)
    shift = params["bn_beta"] - params["bn_rmean"] * scale
    scale = pad2(scale, Cp, 1)
    shift = pad2(shift, Cp, 1)

    v_pad = jnp.pad(v, ((0, 0), (0, Cp - C), (0, Np - N)))

    ordered = [w3, b3, ww, bw, scale, shift]

    def full_spec(arr):
        nd = arr.ndim
        return pl.BlockSpec(arr.shape, lambda b, _nd=nd: (0,) * _nd)

    kernel = functools.partial(_rs_gcn_kernel, N)

    out_pad = pl.pallas_call(
        kernel,
        out_shape=jax.ShapeDtypeStruct((B, Cp, Np), dtype),
        grid_spec=pltpu.PrefetchScalarGridSpec(
            num_scalar_prefetch=0,
            grid=(B,),
            in_specs=[pl.BlockSpec((None, Cp, Np), lambda b: (b, 0, 0))]
                     + [full_spec(a) for a in ordered],
            out_specs=pl.BlockSpec((None, Cp, Np), lambda b: (b, 0, 0)),
        ),
        compiler_params=pltpu.CompilerParams(
            dimension_semantics=("parallel",)),
    )(v_pad, *ordered)

    return out_pad[:, :C, :N]


def rs_gcn_reference(v, params):
    """Pure-JAX reference of the PyTorch forward (bn_layer=True, eval BN)."""
    B, C, N = v.shape
    conv = lambda w, b, x: jnp.einsum("oc,bcn->bon", w, x) + b[None, :, 0, None]
    g_v = conv(params["w_g"], params["b_g"], v)                 # (B, Ci, N)
    th_v = conv(params["w_theta"], params["b_theta"], v)
    ph_v = conv(params["w_phi"], params["b_phi"], v)
    R = jnp.einsum("bcn,bcm->bnm", th_v, ph_v) / N              # (B, N, N)
    y = jnp.einsum("bnm,bcm->bcn", R, g_v)                      # (B, Ci, N)
    w_y = conv(params["w_w"], params["b_w"], y)                 # (B, C, N)
    bn = (w_y - params["bn_rmean"][None]) * jax.lax.rsqrt(params["bn_rvar"][None] + BN_EPS) \
         * params["bn_gamma"][None] + params["bn_beta"][None]
    return bn + v


def init_params(key, in_channels, inter_channels):
    """Parameter init matching the module's shapes.

    Conv1d weights (out, in, 1) are stored squeezed as (out, in); biases as
    (out, 1).  BN affine params are zero-inited as in the PyTorch module;
    running stats are the PyTorch defaults (mean=0, var=1).
    """
    ks = jax.random.split(key, 8)

    def conv_init(kw, kb, out_c, in_c):
        bound = 1.0 / jnp.sqrt(in_c)
        w = jax.random.uniform(kw, (out_c, in_c), jnp.float32, -bound, bound)
        b = jax.random.uniform(kb, (out_c, 1), jnp.float32, -bound, bound)
        return w, b

    w_g, b_g = conv_init(ks[0], ks[1], inter_channels, in_channels)
    w_t, b_t = conv_init(ks[2], ks[3], inter_channels, in_channels)
    w_p, b_p = conv_init(ks[4], ks[5], inter_channels, in_channels)
    w_w, b_w = conv_init(ks[6], ks[7], in_channels, inter_channels)

    return {
        "w_g": w_g, "b_g": b_g,
        "w_theta": w_t, "b_theta": b_t,
        "w_phi": w_p, "b_phi": b_p,
        "w_w": w_w, "b_w": b_w,
        "bn_gamma": jnp.zeros((in_channels, 1), jnp.float32),   # nn.init.constant(0)
        "bn_beta": jnp.zeros((in_channels, 1), jnp.float32),    # nn.init.constant(0)
        "bn_rmean": jnp.zeros((in_channels, 1), jnp.float32),
        "bn_rvar": jnp.ones((in_channels, 1), jnp.float32),
    }


if __name__ == "__main__":
    B, C, N = 2, 4, 16            # batch, in_channels, sequence length
    inter = C // 2                # inter_channels=None -> in_channels // 2

    key = jax.random.PRNGKey(0)
    k_v, k_p, k_bn = jax.random.split(key, 3)
    v = jax.random.normal(k_v, (B, C, N), dtype=jnp.float32)
    params = init_params(k_p, C, inter)

    # The PyTorch module zero-inits BN gamma/beta (so W_y == 0 and out == v
    # exactly); override with nonzero values here so the allclose check
    # actually exercises the projection / relation / W / BN path.
    kb = jax.random.split(k_bn, 4)
    params["bn_gamma"] = jax.random.normal(kb[0], (C, 1), jnp.float32)
    params["bn_beta"] = jax.random.normal(kb[1], (C, 1), jnp.float32)
    params["bn_rmean"] = jax.random.normal(kb[2], (C, 1), jnp.float32) * 0.1
    params["bn_rvar"] = jax.random.uniform(kb[3], (C, 1), jnp.float32, 0.5, 1.5)

    out = rs_gcn_forward(v, params)
    out = jax.block_until_ready(out)

    ref = rs_gcn_reference(v, params)
    assert out.shape == (B, C, N)
    assert jnp.allclose(out, ref, atol=1e-4, rtol=1e-4), "mismatch vs reference"

    print("KERNEL_OK")
</pallas_src>

<mosaic_0001>
module attributes {stable_mosaic.version = 11 : i64} {
  func.func @_rs_gcn_kernel(%arg0: i32, %arg1: memref<1x8x128xf32, #tpu.memory_space<vmem>>, %arg2: memref<24x8xf32, #tpu.memory_space<vmem>>, %arg3: memref<24x1xf32, #tpu.memory_space<vmem>>, %arg4: memref<8x8xf32, #tpu.memory_space<vmem>>, %arg5: memref<8x1xf32, #tpu.memory_space<vmem>>, %arg6: memref<8x1xf32, #tpu.memory_space<vmem>>, %arg7: memref<8x1xf32, #tpu.memory_space<vmem>>, %arg8: memref<1x8x128xf32, #tpu.memory_space<vmem>>) attributes {dimension_semantics = [#tpu.dimension_semantics<parallel>], iteration_bounds = array<i64: 2>, scalar_prefetch = 0 : i64, scratch_operands = 0 : i64, tpu.core_type = #tpu.core_type<tc>, window_params = [{transform_indices = @transform_0, window_bounds = array<i64: 1, 8, 128>}, {pipeline_mode = #tpu.pipeline_mode<synchronous>, transform_indices = @transform_1, window_bounds = array<i64: 24, 8>}, {pipeline_mode = #tpu.pipeline_mode<synchronous>, transform_indices = @transform_2, window_bounds = array<i64: 24, 1>}, {pipeline_mode = #tpu.pipeline_mode<synchronous>, transform_indices = @transform_3, window_bounds = array<i64: 8, 8>}, {pipeline_mode = #tpu.pipeline_mode<synchronous>, transform_indices = @transform_4, window_bounds = array<i64: 8, 1>}, {pipeline_mode = #tpu.pipeline_mode<synchronous>, transform_indices = @transform_5, window_bounds = array<i64: 8, 1>}, {pipeline_mode = #tpu.pipeline_mode<synchronous>, transform_indices = @transform_6, window_bounds = array<i64: 8, 1>}, {transform_indices = @transform_7, window_bounds = array<i64: 1, 8, 128>}]} {
    %c0 = arith.constant 0 : index
    %c0_0 = arith.constant 0 : index
    %c0_1 = arith.constant 0 : index
    %0 = vector.load %arg1[%c0, %c0_0, %c0_1] : memref<1x8x128xf32, #tpu.memory_space<vmem>>, vector<1x8x128xf32>
    %1 = vector.shape_cast %0 : vector<1x8x128xf32> to vector<8x128xf32>
    %c0_2 = arith.constant 0 : index
    %c0_3 = arith.constant 0 : index
    %2 = vector.load %arg2[%c0_2, %c0_3] : memref<24x8xf32, #tpu.memory_space<vmem>>, vector<24x8xf32>
    %cst = arith.constant dense<0.000000e+00> : vector<24x128xf32>
    %3 = tpu.matmul %2, %1, %cst {dimension_numbers = #tpu.dot_dimension_numbers<[1], [0], [0], [1], [0, 0, 1, 1], [], []>} : vector<24x8xf32>, vector<8x128xf32>, vector<24x128xf32> -> vector<24x128xf32>
    %c0_4 = arith.constant 0 : index
    %c0_5 = arith.constant 0 : index
    %4 = vector.load %arg3[%c0_4, %c0_5] : memref<24x1xf32, #tpu.memory_space<vmem>>, vector<24x1xf32>
    %5 = vector.broadcast %4 : vector<24x1xf32> to vector<24x128xf32>
    %6 = arith.addf %3, %5 : vector<24x128xf32>
    %7 = vector.extract_strided_slice %6 {offsets = [0, 0], sizes = [8, 128], strides = [1, 1]} : vector<24x128xf32> to vector<8x128xf32>
    %8 = vector.extract_strided_slice %6 {offsets = [8, 0], sizes = [8, 128], strides = [1, 1]} : vector<24x128xf32> to vector<8x128xf32>
    %9 = vector.extract_strided_slice %6 {offsets = [16, 0], sizes = [8, 128], strides = [1, 1]} : vector<24x128xf32> to vector<8x128xf32>
    %10 = tpu.iota {dimensions = array<i32: 1>} : vector<1x128xi32>
    %c16_i32 = arith.constant 16 : i32
    %11 = vector.broadcast %c16_i32 : i32 to vector<1x128xi32>
    %12 = arith.cmpi slt, %10, %11 : vector<1x128xi32>
    %cst_6 = arith.constant 0.000000e+00 : f32
    %13 = vector.shape_cast %12 : vector<1x128xi1> to vector<1x128xi1>
    %14 = vector.broadcast %13 : vector<1x128xi1> to vector<8x128xi1>
    %15 = vector.broadcast %cst_6 : f32 to vector<8x128xf32>
    %16 = arith.select %14, %9, %15 : vector<8x128xi1>, vector<8x128xf32>
    %cst_7 = arith.constant dense<0.000000e+00> : vector<8x8xf32>
    %17 = tpu.matmul %7, %16, %cst_7 {dimension_numbers = #tpu.dot_dimension_numbers<[1], [1], [0], [0], [0, 0, 1, 0], [], []>} : vector<8x128xf32>, vector<8x128xf32>, vector<8x8xf32> -> vector<8x8xf32>
    %cst_8 = arith.constant 6.250000e-02 : f32
    %18 = vector.broadcast %cst_8 : f32 to vector<8x8xf32>
    %19 = arith.mulf %17, %18 : vector<8x8xf32>
    %cst_9 = arith.constant dense<0.000000e+00> : vector<8x128xf32>
    %20 = tpu.matmul %19, %8, %cst_9 {dimension_numbers = #tpu.dot_dimension_numbers<[1], [0], [0], [1], [0, 0, 1, 1], [], []>} : vector<8x8xf32>, vector<8x128xf32>, vector<8x128xf32> -> vector<8x128xf32>
    %c0_10 = arith.constant 0 : index
    %c0_11 = arith.constant 0 : index
    %21 = vector.load %arg4[%c0_10, %c0_11] : memref<8x8xf32, #tpu.memory_space<vmem>>, vector<8x8xf32>
    %cst_12 = arith.constant dense<0.000000e+00> : vector<8x128xf32>
    %22 = tpu.matmul %21, %20, %cst_12 {dimension_numbers = #tpu.dot_dimension_numbers<[1], [0], [0], [1], [0, 0, 1, 1], [], []>} : vector<8x8xf32>, vector<8x128xf32>, vector<8x128xf32> -> vector<8x128xf32>
    %c0_13 = arith.constant 0 : index
    %c0_14 = arith.constant 0 : index
    %23 = vector.load %arg5[%c0_13, %c0_14] : memref<8x1xf32, #tpu.memory_space<vmem>>, vector<8x1xf32>
    %24 = vector.broadcast %23 : vector<8x1xf32> to vector<8x128xf32>
    %25 = arith.addf %22, %24 : vector<8x128xf32>
    %c0_15 = arith.constant 0 : index
    %c0_16 = arith.constant 0 : index
    %26 = vector.load %arg6[%c0_15, %c0_16] : memref<8x1xf32, #tpu.memory_space<vmem>>, vector<8x1xf32>
    %27 = vector.broadcast %26 : vector<8x1xf32> to vector<8x128xf32>
    %28 = arith.mulf %25, %27 : vector<8x128xf32>
    %c0_17 = arith.constant 0 : index
    %c0_18 = arith.constant 0 : index
    %29 = vector.load %arg7[%c0_17, %c0_18] : memref<8x1xf32, #tpu.memory_space<vmem>>, vector<8x1xf32>
    %30 = vector.broadcast %29 : vector<8x1xf32> to vector<8x128xf32>
    %31 = arith.addf %28, %30 : vector<8x128xf32>
    %32 = arith.addf %31, %1 : vector<8x128xf32>
    %c0_19 = arith.constant 0 : index
    %c0_20 = arith.constant 0 : index
    %c0_21 = arith.constant 0 : index
    %33 = vector.load %arg8[%c0_19, %c0_20, %c0_21] : memref<1x8x128xf32, #tpu.memory_space<vmem>>, vector<1x8x128xf32>
    %34 = vector.shape_cast %33 : vector<1x8x128xf32> to vector<8x128xf32>
    %35 = vector.shape_cast %32 : vector<8x128xf32> to vector<1x8x128xf32>
    tpu.vector_store %arg8[%c0_19, %c0_20, %c0_21], %35 {strides = array<i32>} : memref<1x8x128xf32, #tpu.memory_space<vmem>>, vector<1x8x128xf32>,
    return
  }
  func.func @transform_0(%arg0: i32) -> (i32, i32, i32) {
    %c0_i32 = arith.constant 0 : i32
    %c0_i32_0 = arith.constant 0 : i32
    %c0_i32_1 = arith.constant 0 : i32
    return %arg0, %c0_i32, %c0_i32_0 : i32, i32, i32
  }
  func.func @transform_1(%arg0: i32) -> (i32, i32) {
    %c0_i32 = arith.constant 0 : i32
    %c0_i32_0 = arith.constant 0 : i32
    %c0_i32_1 = arith.constant 0 : i32
    return %c0_i32, %c0_i32_0 : i32, i32
  }
  func.func @transform_2(%arg0: i32) -> (i32, i32) {
    %c0_i32 = arith.constant 0 : i32
    %c0_i32_0 = arith.constant 0 : i32
    %c0_i32_1 = arith.constant 0 : i32
    return %c0_i32, %c0_i32_0 : i32, i32
  }
  func.func @transform_3(%arg0: i32) -> (i32, i32) {
    %c0_i32 = arith.constant 0 : i32
    %c0_i32_0 = arith.constant 0 : i32
    %c0_i32_1 = arith.constant 0 : i32
    return %c0_i32, %c0_i32_0 : i32, i32
  }
  func.func @transform_4(%arg0: i32) -> (i32, i32) {
    %c0_i32 = arith.constant 0 : i32
    %c0_i32_0 = arith.constant 0 : i32
    %c0_i32_1 = arith.constant 0 : i32
    return %c0_i32, %c0_i32_0 : i32, i32
  }
  func.func @transform_5(%arg0: i32) -> (i32, i32) {
    %c0_i32 = arith.constant 0 : i32
    %c0_i32_0 = arith.constant 0 : i32
    %c0_i32_1 = arith.constant 0 : i32
    return %c0_i32, %c0_i32_0 : i32, i32
  }
  func.func @transform_6(%arg0: i32) -> (i32, i32) {
    %c0_i32 = arith.constant 0 : i32
    %c0_i32_0 = arith.constant 0 : i32
    %c0_i32_1 = arith.constant 0 : i32
    return %c0_i32, %c0_i32_0 : i32, i32
  }
  func.func @transform_7(%arg0: i32) -> (i32, i32, i32) {
    %c0_i32 = arith.constant 0 : i32
    %c0_i32_0 = arith.constant 0 : i32
    %c0_i32_1 = arith.constant 0 : i32
    return %arg0, %c0_i32, %c0_i32_0 : i32, i32, i32
  }
}

</mosaic_0001>

<bundles_post_ra>
// kernel: tpu_custom_call.1
= control target key start
LH: loop header
LB: loop body
LE: loop exit
PB: predicated region body
PF: predicated region fallthrough
CT: control target
= control target key end

     0   :  { %12 = vsyncpa [#allocation3], 0  ;;  %s1050_s0 = inlined_call_operand.vmem [shape: f32[2,8,128], index: 0, kind: input, shape index: {}]   ;;  %s1051_s1 = inlined_call_operand.vmem [shape: f32[24,8], index: 1, kind: input, shape index: {}]   ;;  %s1052_s2 = inlined_call_operand.vmem [shape: f32[24,1], index: 2, kind: input, shape index: {}]   ;;  %s1053_s3 = inlined_call_operand.vmem [shape: f32[8,8], index: 3, kind: input, shape index: {}]   ;;  %s1054_s4 = inlined_call_operand.vmem [shape: f32[8,1], index: 4, kind: input, shape index: {}]   ;;  %s1055_s5 = inlined_call_operand.vmem [shape: f32[8,1], index: 5, kind: input, shape index: {}]   ;;  %s1056_s6 = inlined_call_operand.vmem [shape: f32[8,1], index: 6, kind: input, shape index: {}]   ;;  %s1057_s7 = inlined_call_operand.hbm [shape: f32[2,8,128], index: 7, kind: output, shape index: {}]  }
   0x1   :  { %14 = vsyncpa [#allocation3 + $0x1], 0  ;;  %s909_s24 = smov 0   ;;  %s911_s25 = smov 0  }
   0x2   :  { %s913_s26 = smov 0   ;;  %s915_s27 = smov 0  }
   0x3 LB: > { %s930_s28 = sadd.s32 4294967295, %s863_s27   ;;  %s705_s29 = sadd.s32 4294967294, %s863_s27   ;;  %s863_s27 = sphi %s915_s27, %s1063_s27   ;;  %s859_s26 = sphi %s913_s26, %s1062_s26   ;;  %s855_s25 = sphi %s911_s25, %s1061_s25   ;;  %s851_s24 = sphi %s909_s24, %s1060_s24  }
   0x4   : > { %s934_s30 = sadd.s32 1, %s863_s27   ;;  %s179_s8 = sadd.s32 1, %s859_s26 }
   0x5   : > { %s176_s9 = ssub.s32 %s863_s27, %s934_s30  ;;  %p189_p0 = scmp.ne.s32.totalorder %s859_s26, %s855_s25 }
   0x6   : > { %p177_p1 = scmp.eq.s32.totalorder %s176_s9, 0  ;;  %p190_p2 = scmp.eq.s32.totalorder %s930_s28, 1 }
   0x7   : > { %p195_p3 = scmp.ne.s32.totalorder %s855_s25, %s851_s24  ;;  %p196_p4 = scmp.eq.s32.totalorder %s705_s29, 1 }
   0x8   : > { %s945_s10 = scalar_select %p177_p1, %s859_s26, %s179_s8  }
   0x9   : > { %p947_p5 = por %p190_p2, %p189_p0  ;;  %p951_p6 = por %p196_p4, %p195_p3 }
   0xa   : > { %p708_p7 = scmp.ge.s32.totalorder %s863_s27, 1  ;;  %p239_p8 = scmp.lt.s32.totalorder %s863_s27, 3 }
   0xc   : > { %p240_p9 = pnand %p708_p7, %p239_p8 }
   0xd   : > { %p270_p10 = scmp.lt.s32.totalorder (!%p240_p9), %s930_s28, 1  ;;  %v865_v0 = vmov (!%p240_p9), 0.0   ;;  %vm866_vm0 = vmmov (!%p240_p9), 0   ;;  %v280_v1 = vld [vmem:[%s1052_s2 + $0x10] sm:$0xff] (!%p240_p9)  ;;  %v867_v2 = vmov (!%p240_p9), 0   ;;  %v279_v3 = vld [vmem:[%s1052_s2 + $0x8] sm:$0xff] (!%p240_p9)  ;;  %v386_v13 = vlaneseq (!%p240_p9) }
   0xe   : > { %243 = sbr.rel (%p240_p9) target bundleno = 913 (0x391), region = 48  ;;  %731 = vmatprep.subr.mxu0 (!%p240_p9), %v865_v0  ;;  %733 = vmatprep.mubr.msk.f32.mxu0 (!%p240_p9), %vm866_vm0, %v865_v0  ;;  %v278_v4 = vld [vmem:[%s1052_s2] sm:$0xff] (!%p240_p9)  ;;  %vm296_vm1 = vcmask (!%p240_p9), 64512   ;;  %v276_v8 = vld [vmem:[%s1051_s1 + $0x8] sm:$0xff] (!%p240_p9)  ;;  %v277_v9 = vld [vmem:[%s1051_s1 + $0x10] sm:$0xff] (!%p240_p9)  ;;  %s267_s29 = sand.u32 (!%p240_p9), 1, %s855_s25  }
   0xf   : > { %799 = vset.pattern.permute.xlu0 (!%p240_p9), %v867_v2  ;;  %800 = vset.pattern.permute.xlu1 (!%p240_p9), %v867_v2  ;;  %v275_v5 = vld [vmem:[%s1051_s1] sm:$0xff] (!%p240_p9)  ;;  %v387_v17 = vand.u32 (!%p240_p9), 127, %v386_v13  ;;  %s709_s8 = sshll.u32 (!%p240_p9), %s267_s29, 3  ;;  %s718_s9 = sshll.u32 (!%p240_p9), %s930_s28, 7 }
  0x10   : > { %293 = vperm.xlu0 (!%p240_p9), %799, %v280_v1   ;;  %288 = vperm.xlu1 (!%p240_p9), %800, %v279_v3   ;;  %v616_v7 = vld [vmem:[%s1055_s5] sm:$0xff] (!%p240_p9)  ;;  %s269_s13 = scalar_lea.vmem (!%p240_p9), [#allocation2], %s709_s8  ;;  %s1008_s17 = scalar_lea.hbm (!%p240_p9), %s1057_s7, %s718_s9 }
  0x11   : > { %742 = vmatprep.subr.mxu1 (!%p240_p9), %v865_v0  ;;  %744 = vmatprep.mubr.msk.f32.mxu1 (!%p240_p9), %vm866_vm0, %v865_v0  ;;  %v537_v10 = vld [vmem:[%s1054_s4] sm:$0xff] (!%p240_p9)  ;;  %vm388_vm2 = vcmp.lt.s32.totalorder (!%p240_p9), %v387_v17, 16  ;;  %s646_s14 = sshll.u32 (!%p240_p9), %s269_s13, 4  ;;  %s1010_s14 = int_to_ptr.vmem [resolvable:$true] %s646_s14 }
  0x12   : > { %v623_v11 = vld [vmem:[%s1056_s6] sm:$0xff] (!%p240_p9)  ;;  %s801_s19 = scalar_lea.vmem (!%p240_p9), %s1010_s14, 128 }
  0x13   : > { %v536_v29 = vld [vmem:[%s1053_s3] sm:$0xff] (!%p240_p9)  ;;  %p802_p11 = scmp.ne.s32.totalorder (!%p240_p9), %s1010_s14, %s801_s19 }
  0x14   : > { %283 = vperm.xlu0 (!%p240_p9), %799, %v278_v4   ;;  %540 = vperm.xlu1 (!%p240_p9), %800, %v537_v10  }
  0x15   : > { %s271_s15 = scalar_select %p270_p10, %s930_s28, 1 }
  0x16   : > { %p803_p12 = pnand %p802_p11, %p947_p5  ;;  %s868_s28 = smov [#allocation2]  }
  0x17   : > { %s710_s18 = sshll.u32 %s271_s15, 3  ;;  %s805_s20 = sshll.u32 %s868_s28, 4  ;;  %s806_s20 = int_to_ptr.vmem [resolvable:$false] %s805_s20 }
  0x18   : > { %s273_s23 = scalar_lea.vmem %s1050_s0, %s710_s18  ;;  %619 = vperm.xlu0 %799, %v616_v7   ;;  %626 = vperm.xlu1 %800, %v623_v11   ;;  %s633_s18 = scalar_lea.sflag [#allocation3], %s267_s29 }
  0x19   : > { %v274_v6 = vld [vmem:[%s273_s23] sm:$0xff]  ;;  %p804_p13 = pneg %p803_p12  ;;  %s807_s21 = scalar_lea.vmem %s806_s20, 256 }
  0x1a   : > { %732 = vmatpush3.msra.mxu0 %v274_v6  ;;  %p808_p0 = scmp.lt.s32.totalorder %s1010_s14, %s806_s20  ;;  %p809_p1 = scmp.lt.s32.totalorder %s807_s21, %s801_s19 }
  0x1b   : > { %734 = vmatmul.mubr.msk.f32.vlgmr.msra.gmra.mrb[0].mxu0 %vm296_vm1, %v275_v5 }
  0x1c   : > { %736 = vmatprep.mubr.msk.f32.mxu0 %vm866_vm0, %v865_v0  ;;  %p810_p2 = por %p809_p1, %p808_p0 }
  0x1e   : > { %p811_p3 = pnand %p810_p2, %p804_p13 }
  0x1f   : > { %737 = vmatmul.mubr.msk.f32.gmra.mrb[2].mxu0 %vm296_vm1, %v276_v8 }
  0x20   : > { %739 = vmatprep.mubr.msk.f32.mxu0 %vm866_vm0, %v865_v0 }
  0x23   : > { %740 = vmatmul.mubr.msk.f32.gmra.mrb[4].mxu0 %vm296_vm1, %v277_v9 }
  0x8f   : > { %v294_v15 = vpop.permute.xlu0 %293  ;;  %v289_v23 = vpop.permute.xlu1 %288 }
  0x93   : > { %v284_v20 = vpop.permute.xlu0 %283  ;;  %v541_v32 = vpop.permute.xlu1 %540 }
  0x97   : > { %v620_v36 = vpop.permute.xlu0 %619  ;;  %v627_v38 = vpop.permute.xlu1 %626 }
  0xee   : > { %v372_v12 = vpop.f32.mrb[0].mxu0 }
  0xef   : > { %v735_v14 = vpop.f32.mrb[1].mxu0  ;;  %v373_v24 = vadd.f32 %v372_v12, %v284_v20 }
  0xf2   : > { %v377_v16 = vpop.f32.mrb[2].mxu0 }
  0xf3   : > { %v738_v18 = vpop.f32.mrb[3].mxu0  ;;  %v378_v25 = vadd.f32 %v377_v16, %v289_v23 }
  0xf6   : > { %v382_v19 = vpop.f32.mrb[4].mxu0 }
  0xf7   : > { %v383_v21 = vadd.f32 %v382_v19, %v294_v15  ;;  %v741_v22 = vpop.f32.mrb[5].mxu0 }
  0xf9   : > { %743 = vmatpush3.xpose.msk.msra.mxu1 %vm388_vm2, %v383_v21 }
  0xfa   : > { %747 = vmatprep.subr.mxu1 %v865_v0 }
  0xfc   : > { %745 = vmatmul.mubr.f32.vlgmr.msra.gmra.mrb[0].mxu1 %v373_v24 }
  0xfd   : > { %748 = vmatpush3.msra.mxu1 %v378_v25  ;;  %749 = vmatprep.mubr.msk.f32.mxu1 %vm866_vm0, %v865_v0 }
  0xfe   : > { %752 = vmatprep.subr.mxu1 %v865_v0 }
 0x1cf   : > { %v458_v26 = vpop.f32.mrb[0].mxu1 }
 0x1d0   : > { %v462_v27 = vmul.f32 0.0625, %v458_v26  ;;  %v746_v28 = vpop.f32.mrb[1].mxu1 }
 0x1d2   : > { %750 = vmatmul.mubr.msk.f32.vlgmr.msra.gmra.mrb[2].mxu1 %vm296_vm1, %v462_v27 }
 0x1d3   : > { %754 = vmatprep.mubr.msk.f32.mxu1 %vm866_vm0, %v865_v0 }
 0x2a5   : > { %v532_v30 = vpop.f32.mrb[2].mxu1 }
 0x2a6   : > { %v751_v31 = vpop.f32.mrb[3].mxu1  ;;  %753 = vmatpush3.msra.mxu1 %v532_v30 }
 0x2a7   : > { %755 = vmatmul.mubr.msk.f32.vlgmr.msra.gmra.mrb[4].mxu1 %vm296_vm1, %v536_v29 }
 0x37a   : > { %v612_v33 = vpop.f32.mrb[4].mxu1 }
 0x37b   : > { %v613_v34 = vadd.f32 %v612_v33, %v541_v32  ;;  %v756_v35 = vpop.f32.mrb[5].mxu1 }
 0x37d   : > { %v622_v37 = vmul.f32 %v620_v36, %v613_v34 }
 0x37f   : > { %v629_v39 = vadd.f32 %v627_v38, %v622_v37 }
 0x381   : > { %v630_v40 = vadd.f32 %v629_v39, %v274_v6 }
 0x383   : > { %631 = vst [vmem:[%s269_s13] sm:$0xff] %v630_v40 }
 0x384   : > { %814 = shalt.err (!%p811_p3)
}
 0x385   : > { %s815_s22 = scalar_lea.hbm %s1008_s17, 128  ;;  %s819_s8 = scalar_lea.hbm %s1057_s7, 256 }
 0x386   : > { %p816_p4 = scmp.ne.s32.totalorder %s1008_s17, %s815_s22  ;;  %p820_p9 = scmp.lt.u32.totalorder %s1008_s17, %s1057_s7 }
 0x387   : > { %p821_p10 = scmp.lt.u32.totalorder %s819_s8, %s815_s22  ;;  %p823_p12 = scmp.lt.u32.totalorder %s815_s22, %s1008_s17 }
 0x388   : > { %p817_p7 = pnand %p816_p4, %p947_p5 }
 0x389   : > { %p822_p11 = por %p821_p10, %p820_p9 }
 0x38a   : > { %p818_p8 = pneg %p817_p7 }
 0x38b   : > { %p824_p13 = por %p823_p12, %p822_p11 }
 0x38d   : > { %p825_p0 = pnand %p824_p13, %p818_p8 }
 0x38f   : > { %828 = shalt.err (!%p825_p0)
}
 0x390   : > { %757 = dma.vmem_to_hbm [thread:$0]  (%p947_p5), %s1010_s14, 128, %s1008_s17, %s633_s18  }
 0x391 PF: > { %p763_p1 = scmp.ge.s32.totalorder %s863_s27, 2  ;;  %s658_s15 = sand.u32 1, %s851_s24  }
 0x392   : > { %s659_s16 = scalar_lea.sflag [#allocation3], %s658_s15 }
 0x393   : > { %p760_p2 = pnand %p763_p1, %p951_p6 }
 0x395   : > { %846 = dma.done.wait (!%p760_p2), %s659_s16, 128  }
 0x396   : > { %848 = vsyncadd (!%p760_p2), %s659_s16, 4294967168  ;;  %p17_p3 = scmp.ge.s32.totalorder %s934_s30, 4   ;;  %s1060_s24 = smov %s855_s25 }
 0x397   : > { %s1061_s25 = smov %s859_s26  ;;  %s1062_s26 = smov %s945_s10 }
 0x398   : > { %s1063_s27 = smov %s934_s30  ;;  %19 = sbr.rel (!%p17_p3) target bundleno = 3 (0x3), region = 83 }
 0x39f   :  { %664 = vsyncpa [#allocation3], 1 }
 0x3a0   :  { %666 = vsyncpa [#allocation3 + $0x1], 1 }

</bundles_post_ra>
